<compile_context>
chip_gen: v7x
topology: tpu7x:2x2x1
jax: 0.10.0
libtpu: 0.0.40
codegen_flags: <defaults>
</compile_context>

<pallas_src>
import numpy as np
import jax
import jax.numpy as jnp
from jax import lax
from jax.experimental import pallas as pl
from jax.experimental.pallas import tpu as pltpu

INV_LOG2 = 1.0 / float(np.log(2.0))
LANE = 128


def _entropy_kernel(x_ref, o_ref):
    # x_ref: (C, S, 128) input block in VMEM (input dtype)
    # o_ref: (S, 128)   output block (input dtype)
    C = x_ref.shape[0]
    S, L = o_ref.shape
    unroll = True if C <= 16 else 8

    # Pass 1: running max over channels (streamed, channel-by-channel).
    def max_body(c, m):
        return jnp.maximum(m, x_ref[c].astype(jnp.float32))

    m = lax.fori_loop(1, C, max_body, x_ref[0].astype(jnp.float32),
                      unroll=unroll)

    # Pass 2: accumulate s = sum_c exp(z_c) and sez = sum_c exp(z_c) * z_c,
    # z_c = x_c - max.  Re-reading the block from VMEM is cheap (3 vld/cycle).
    def acc_body(c, carry):
        s_acc, sez_acc = carry
        z = x_ref[c].astype(jnp.float32) - m
        e = jnp.exp(z)
        return s_acc + e, sez_acc + e * z

    zero = jnp.zeros((S, L), jnp.float32)
    s, sez = lax.fori_loop(0, C, acc_body, (zero, zero), unroll=unroll)

    # -(sum p*logp) = log(s) - sez/s ; convert nats -> bits.
    ent = (jnp.log(s) - sez / s) * INV_LOG2
    o_ref[...] = ent.astype(o_ref.dtype)


def entropy(x, *, s_tile_rows=None):
    """x: (B, C, H, W) float array -> (B, H, W) channel entropy in bits."""
    B, C, H, W = x.shape
    HW = H * W
    in_itemsize = np.dtype(x.dtype).itemsize
    out_dtype = x.dtype if jnp.issubdtype(x.dtype, jnp.floating) else jnp.float32
    out_itemsize = np.dtype(out_dtype).itemsize

    rows = pl.cdiv(HW, LANE)  # 128-lane rows of flattened spatial

    # ---- generation-aware VMEM budget --------------------------------------
    try:
        vmem_cap = int(pltpu.get_tpu_info().vmem_capacity_bytes)
    except Exception:
        vmem_cap = 64 * 1024 * 1024  # conservative (v7x per-TC)

    # Footprint per spatial row: double-buffered input + output blocks plus
    # ~8 f32 (S,128) in-kernel temporaries (m, s, sez, z, e, ent, slack).
    per_row = (2 * C * LANE * in_itemsize + 2 * LANE * out_itemsize
               + 8 * LANE * 4)
    budget = int(0.35 * vmem_cap)

    if s_tile_rows is not None:
        s_tile = int(s_tile_rows)
    elif rows <= 8:
        s_tile = rows  # full extent: exempt from the 8-divisibility rule
    else:
        s_tile = max(8, (budget // per_row) // 8 * 8)
        s_tile = min(s_tile, ((rows + 7) // 8) * 8)
        # Keep >= ~8 total grid steps so the DMA pipeline overlaps and both
        # v7x TensorCores get work; never below the 8-row minimum tile.
        while B * pl.cdiv(rows, s_tile) < 8 and s_tile > 8:
            s_tile = max(8, (s_tile // 2) // 8 * 8)
    n_s = pl.cdiv(rows, s_tile)

    in_block = C * s_tile * LANE * in_itemsize
    out_block = s_tile * LANE * out_itemsize
    interm = 8 * s_tile * LANE * 4
    vmem_need = 2 * (in_block + out_block) + interm + (2 << 20)
    # TODO(synk): add a channel-tiled ("arbitrary" C grid axis, online-softmax
    # accumulators) path for C so large that a minimum-height block won't fit.
    assert vmem_need <= int(0.9 * vmem_cap), (
        f"Entropy block needs ~{vmem_need} B of VMEM but only {vmem_cap} B "
        "available; C too large for the single-pass channel reduction.")
    vmem_limit = int(min(max(vmem_need, 16 * 1024 * 1024),
                         int(0.9 * vmem_cap)))

    # Flatten spatial to dense 128-lane rows; pad only to a LANE multiple when
    # required for the reshape.  The final partial spatial block (rows not a
    # multiple of s_tile) is handled by Pallas: OOB output rows are masked and
    # OOB input garbage only affects lanes that are discarded.
    x2 = x.reshape(B, C, HW)
    HW_pad = rows * LANE
    if HW_pad != HW:
        x2 = jnp.pad(x2, ((0, 0), (0, 0), (0, HW_pad - HW)))
    x3 = x2.reshape(B, C, rows, LANE)

    out = pl.pallas_call(
        _entropy_kernel,
        out_shape=jax.ShapeDtypeStruct((B, rows, LANE), out_dtype),
        grid_spec=pltpu.PrefetchScalarGridSpec(
            num_scalar_prefetch=0,
            grid=(B, n_s),
            in_specs=[pl.BlockSpec((pl.Squeezed(), C, s_tile, LANE),
                                   lambda b, s: (b, 0, s, 0))],
            out_specs=pl.BlockSpec((pl.Squeezed(), s_tile, LANE),
                                   lambda b, s: (b, s, 0)),
        ),
        compiler_params=pltpu.CompilerParams(
            dimension_semantics=("parallel", "parallel"),
            vmem_limit_bytes=vmem_limit),
    )(x3)

    out = out.reshape(B, HW_pad)
    if HW_pad != HW:
        out = out[:, :HW]
    return out.reshape(B, H, W)


def _entropy_ref(x):
    # pure-JAX reference mirroring the PyTorch module
    p = jax.nn.softmax(x, axis=1)
    lp = jax.nn.log_softmax(x, axis=1)
    return -(p * lp).sum(axis=1) / np.log(2.0)


if __name__ == "__main__":
    key = jax.random.PRNGKey(0)
    k0, k1, k2, k3 = jax.random.split(key, 4)

    # Main test: (B, C, H, W) usage implied by the module (softmax over dim=1).
    x = jax.random.normal(k0, (2, 4, 16, 16), dtype=jnp.float32)
    y = entropy(x)
    jax.block_until_ready(y)
    assert y.shape == (2, 16, 16) and y.dtype == x.dtype
    np.testing.assert_allclose(np.asarray(y), np.asarray(_entropy_ref(x)),
                               rtol=1e-5, atol=1e-5)

    # Unaligned spatial size (HW % 128 != 0): lane pad + slice-off path.
    x_odd = jax.random.normal(k1, (2, 5, 7, 9), dtype=jnp.float32)
    y_odd = entropy(x_odd)
    jax.block_until_ready(y_odd)
    np.testing.assert_allclose(np.asarray(y_odd),
                               np.asarray(_entropy_ref(x_odd)),
                               rtol=1e-5, atol=1e-5)

    # Multi-tile spatial grid with a PARTIAL final block (rows=20, tile=8):
    # exercises the no-extra-pad / masked-OOB-write path.
    x_big = jax.random.normal(k2, (1, 4, 40, 64), dtype=jnp.float32)
    y_big = entropy(x_big, s_tile_rows=8)
    jax.block_until_ready(y_big)
    np.testing.assert_allclose(np.asarray(y_big),
                               np.asarray(_entropy_ref(x_big)),
                               rtol=1e-5, atol=1e-5)

    # bf16 input -> bf16 output (PyTorch dtype semantics), f32 math inside.
    x_bf = jax.random.normal(k3, (2, 8, 16, 16), dtype=jnp.bfloat16)
    y_bf = entropy(x_bf)
    jax.block_until_ready(y_bf)
    assert y_bf.dtype == jnp.bfloat16
    ref_bf = _entropy_ref(x_bf.astype(jnp.float32))
    np.testing.assert_allclose(np.asarray(y_bf.astype(jnp.float32)),
                               np.asarray(ref_bf), rtol=3e-2, atol=3e-2)

    print("KERNEL_OK")
</pallas_src>

<mosaic_0001>
module attributes {stable_mosaic.version = 11 : i64} {
  func.func @_entropy_kernel(%arg0: i32, %arg1: i32, %arg2: memref<1x4x2x128xf32, #tpu.memory_space<vmem>>, %arg3: memref<1x2x128xf32, #tpu.memory_space<vmem>>) attributes {dimension_semantics = [#tpu.dimension_semantics<parallel>, #tpu.dimension_semantics<parallel>], iteration_bounds = array<i64: 2, 1>, scalar_prefetch = 0 : i64, scratch_operands = 0 : i64, tpu.core_type = #tpu.core_type<tc>, window_params = [{transform_indices = @transform_0, window_bounds = array<i64: 1, 4, 2, 128>}, {transform_indices = @transform_1, window_bounds = array<i64: 1, 2, 128>}]} {
    %c0 = arith.constant 0 : index
    %c0_0 = arith.constant 0 : index
    %c0_1 = arith.constant 0 : index
    %c0_2 = arith.constant 0 : index
    %0 = vector.load %arg2[%c0, %c0_0, %c0_1, %c0_2] : memref<1x4x2x128xf32, #tpu.memory_space<vmem>>, vector<1x1x2x128xf32>
    %1 = vector.shape_cast %0 : vector<1x1x2x128xf32> to vector<2x128xf32>
    %c1_i32 = arith.constant 1 : i32
    %c0_3 = arith.constant 0 : index
    %2 = arith.index_cast %c1_i32 : i32 to index
    %c0_4 = arith.constant 0 : index
    %c0_5 = arith.constant 0 : index
    %3 = vector.load %arg2[%c0_3, %2, %c0_4, %c0_5] : memref<1x4x2x128xf32, #tpu.memory_space<vmem>>, vector<1x1x2x128xf32>
    %4 = vector.shape_cast %3 : vector<1x1x2x128xf32> to vector<2x128xf32>
    %5 = arith.maximumf %1, %4 : vector<2x128xf32>
    %c2_i32 = arith.constant 2 : i32
    %c0_6 = arith.constant 0 : index
    %6 = arith.index_cast %c2_i32 : i32 to index
    %c0_7 = arith.constant 0 : index
    %c0_8 = arith.constant 0 : index
    %7 = vector.load %arg2[%c0_6, %6, %c0_7, %c0_8] : memref<1x4x2x128xf32, #tpu.memory_space<vmem>>, vector<1x1x2x128xf32>
    %8 = vector.shape_cast %7 : vector<1x1x2x128xf32> to vector<2x128xf32>
    %9 = arith.maximumf %5, %8 : vector<2x128xf32>
    %c3_i32 = arith.constant 3 : i32
    %c0_9 = arith.constant 0 : index
    %10 = arith.index_cast %c3_i32 : i32 to index
    %c0_10 = arith.constant 0 : index
    %c0_11 = arith.constant 0 : index
    %11 = vector.load %arg2[%c0_9, %10, %c0_10, %c0_11] : memref<1x4x2x128xf32, #tpu.memory_space<vmem>>, vector<1x1x2x128xf32>
    %12 = vector.shape_cast %11 : vector<1x1x2x128xf32> to vector<2x128xf32>
    %13 = arith.maximumf %9, %12 : vector<2x128xf32>
    %c3_i32_12 = arith.constant 3 : i32
    %cst = arith.constant 0.000000e+00 : f32
    %14 = vector.broadcast %cst : f32 to vector<2x128xf32>
    %c0_i32 = arith.constant 0 : i32
    %c0_13 = arith.constant 0 : index
    %15 = arith.index_cast %c0_i32 : i32 to index
    %c0_14 = arith.constant 0 : index
    %c0_15 = arith.constant 0 : index
    %16 = vector.load %arg2[%c0_13, %15, %c0_14, %c0_15] : memref<1x4x2x128xf32, #tpu.memory_space<vmem>>, vector<1x1x2x128xf32>
    %17 = vector.shape_cast %16 : vector<1x1x2x128xf32> to vector<2x128xf32>
    %18 = arith.subf %17, %13 : vector<2x128xf32>
    %19 = math.exp %18 : vector<2x128xf32>
    %20 = arith.addf %14, %19 : vector<2x128xf32>
    %21 = arith.mulf %19, %18 : vector<2x128xf32>
    %22 = arith.addf %14, %21 : vector<2x128xf32>
    %c1_i32_16 = arith.constant 1 : i32
    %c0_17 = arith.constant 0 : index
    %23 = arith.index_cast %c1_i32_16 : i32 to index
    %c0_18 = arith.constant 0 : index
    %c0_19 = arith.constant 0 : index
    %24 = vector.load %arg2[%c0_17, %23, %c0_18, %c0_19] : memref<1x4x2x128xf32, #tpu.memory_space<vmem>>, vector<1x1x2x128xf32>
    %25 = vector.shape_cast %24 : vector<1x1x2x128xf32> to vector<2x128xf32>
    %26 = arith.subf %25, %13 : vector<2x128xf32>
    %27 = math.exp %26 : vector<2x128xf32>
    %28 = arith.addf %20, %27 : vector<2x128xf32>
    %29 = arith.mulf %27, %26 : vector<2x128xf32>
    %30 = arith.addf %22, %29 : vector<2x128xf32>
    %c2_i32_20 = arith.constant 2 : i32
    %c0_21 = arith.constant 0 : index
    %31 = arith.index_cast %c2_i32_20 : i32 to index
    %c0_22 = arith.constant 0 : index
    %c0_23 = arith.constant 0 : index
    %32 = vector.load %arg2[%c0_21, %31, %c0_22, %c0_23] : memref<1x4x2x128xf32, #tpu.memory_space<vmem>>, vector<1x1x2x128xf32>
    %33 = vector.shape_cast %32 : vector<1x1x2x128xf32> to vector<2x128xf32>
    %34 = arith.subf %33, %13 : vector<2x128xf32>
    %35 = math.exp %34 : vector<2x128xf32>
    %36 = arith.addf %28, %35 : vector<2x128xf32>
    %37 = arith.mulf %35, %34 : vector<2x128xf32>
    %38 = arith.addf %30, %37 : vector<2x128xf32>
    %c3_i32_24 = arith.constant 3 : i32
    %c0_25 = arith.constant 0 : index
    %39 = arith.index_cast %c3_i32_24 : i32 to index
    %c0_26 = arith.constant 0 : index
    %c0_27 = arith.constant 0 : index
    %40 = vector.load %arg2[%c0_25, %39, %c0_26, %c0_27] : memref<1x4x2x128xf32, #tpu.memory_space<vmem>>, vector<1x1x2x128xf32>
    %41 = vector.shape_cast %40 : vector<1x1x2x128xf32> to vector<2x128xf32>
    %42 = arith.subf %41, %13 : vector<2x128xf32>
    %43 = math.exp %42 : vector<2x128xf32>
    %44 = arith.addf %36, %43 : vector<2x128xf32>
    %45 = arith.mulf %43, %42 : vector<2x128xf32>
    %46 = arith.addf %38, %45 : vector<2x128xf32>
    %c4_i32 = arith.constant 4 : i32
    %47 = math.log %44 : vector<2x128xf32>
    %48 = arith.divf %46, %44 : vector<2x128xf32>
    %49 = arith.subf %47, %48 : vector<2x128xf32>
    %cst_28 = arith.constant 1.44269502 : f32
    %50 = vector.broadcast %cst_28 : f32 to vector<2x128xf32>
    %51 = arith.mulf %49, %50 : vector<2x128xf32>
    %c0_29 = arith.constant 0 : index
    %c0_30 = arith.constant 0 : index
    %c0_31 = arith.constant 0 : index
    %52 = vector.load %arg3[%c0_29, %c0_30, %c0_31] : memref<1x2x128xf32, #tpu.memory_space<vmem>>, vector<1x2x128xf32>
    %53 = vector.shape_cast %52 : vector<1x2x128xf32> to vector<2x128xf32>
    %54 = vector.shape_cast %51 : vector<2x128xf32> to vector<1x2x128xf32>
    tpu.vector_store %arg3[%c0_29, %c0_30, %c0_31], %54 {strides = array<i32>} : memref<1x2x128xf32, #tpu.memory_space<vmem>>, vector<1x2x128xf32>,
    return
  }
  func.func @transform_0(%arg0: i32, %arg1: i32) -> (i32, i32, i32, i32) {
    %c0_i32 = arith.constant 0 : i32
    %c0_i32_0 = arith.constant 0 : i32
    %c0_i32_1 = arith.constant 0 : i32
    return %arg0, %c0_i32, %arg1, %c0_i32_0 : i32, i32, i32, i32
  }
  func.func @transform_1(%arg0: i32, %arg1: i32) -> (i32, i32, i32) {
    %c0_i32 = arith.constant 0 : i32
    %c0_i32_0 = arith.constant 0 : i32
    return %arg0, %arg1, %c0_i32 : i32, i32, i32
  }
}

</mosaic_0001>

<bundles_post_ra>
// kernel: tpu_custom_call.1
= control target key start
LH: loop header
LB: loop body
LE: loop exit
PB: predicated region body
PF: predicated region fallthrough
CT: control target
= control target key end

     0   :  { %6 = vsyncpa [#allocation3], 0  ;;  %s685_s0 = inlined_call_operand.hbm [shape: f32[2,4,2,128], index: 0, kind: input, shape index: {}]   ;;  %s686_s1 = inlined_call_operand.hbm [shape: f32[2,2,128], index: 1, kind: output, shape index: {}]  }
   0x1   :  { %8 = vsyncpa [#allocation3 + $0x1], 0 }
   0x2   :  { %9 = vsyncpa [#allocation4], 0 }
   0x3   :  { %11 = vsyncpa [#allocation4 + $0x1], 0  ;;  %s511_s6 = smov 0   ;;  %s513_s7 = smov 0  }
   0x4   :  { %s515_s8 = smov 0   ;;  %s517_s9 = smov 0  }
   0x5   :  { %s519_s10 = smov 0   ;;  %s521_s11 = smov 0  }
   0x6 LB: > { %s289_s12 = sadd.s32 4294967295, %s495_s11   ;;  %s290_s13 = sadd.s32 4294967294, %s495_s11   ;;  %s495_s11 = sphi %s521_s11, %s17_s11   ;;  %s491_s10 = sphi %s519_s10, %s701_s10   ;;  %s487_s9 = sphi %s517_s9, %s700_s9   ;;  %s483_s8 = sphi %s515_s8, %s699_s8   ;;  %s479_s7 = sphi %s513_s7, %s698_s7   ;;  %s475_s6 = sphi %s511_s6, %s697_s6  }
   0x7   : > { %s29_s14 = sadd.s32 1, %s491_s10  ;;  %s38_s15 = sadd.s32 1, %s483_s8 }
   0x8   : > { %p31_p0 = scmp.ge.s32.totalorder %s29_s14, 2  ;;  %p45_p1 = scmp.ne.s32.totalorder %s483_s8, %s479_s7 }
   0x9   : > { %p46_p2 = scmp.eq.s32.totalorder %s495_s11, 0  ;;  %p51_p3 = scmp.ne.s32.totalorder %s479_s7, %s475_s6 }
   0xa   : > { %s703_s14 = smov (%p31_p0, %s29_s14), 0  ;;  %p52_p5 = scmp.eq.s32.totalorder %s289_s12, 0 }
   0xb   : > { %p552_p4 = por %p46_p2, %p45_p1  ;;  %s33_s17 = ssub.s32 %s491_s10, %s703_s14 }
   0xc   : > { %p77_p6 = scmp.eq.s32.totalorder %s289_s12, 1  ;;  %p36_p7 = scmp.eq.s32.totalorder %s33_s17, 0 }
   0xd   : > { %p558_p8 = por %p52_p5, %p51_p3  ;;  %p83_p10 = scmp.eq.s32.totalorder %s290_s13, 1 }
   0xe   : > { %p562_p9 = por %p77_p6, %p45_p1  ;;  %p319_p13 = scmp.lt.s32.totalorder %s495_s11, 2 }
   0xf   : > { %s567_s20 = scalar_select %p36_p7, %s483_s8, %s38_s15  }
  0x10   : > { %s690_s19 = scalar_select %p562_p9, 1, 0 }
  0x11   : > { %p569_p11 = por %p83_p10, %p51_p3  ;;  %s103_s22 = sand.u32 1, %s483_s8  }
  0x12   : > { %s293_s23 = sshll.u32 %s103_s22, 3  ;;  %s306_s24 = sshll.u32 %s491_s10, 7 }
  0x13   : > { %s691_s21 = scalar_select %p569_p11, 1, 0 }
  0x14   : > { %s580_s27 = scalar_lea.hbm %s685_s0, %s306_s24  ;;  %s107_s28 = scalar_lea.vmem [#allocation2], %s293_s23 }
  0x15   : > { %s115_s29 = sshll.u32 %s107_s28, 4  ;;  %p586_p0 = pnand %p319_p13, %p552_p4  ;;  %s582_s29 = int_to_ptr.vmem [resolvable:$true] %s115_s29 }
  0x16   : > { %s591_s2 = scalar_lea.sflag [#allocation3], %s103_s22  ;;  %s383_s3 = scalar_lea.hbm %s580_s27, 128 }
  0x17   : > { %p384_p2 = scmp.ne.s32.totalorder %s580_s27, %s383_s3  ;;  %p385_p3 = pneg %p586_p0 }
  0x18   : > { %s388_s12 = scalar_lea.hbm %s685_s0, 256  ;;  %p389_p4 = scmp.lt.u32.totalorder %s580_s27, %s685_s0 }
  0x19   : > { %p386_p5 = pnand %p385_p3, %p384_p2  ;;  %p390_p7 = scmp.lt.u32.totalorder %s388_s12, %s383_s3 }
  0x1a   : > { %p392_p13 = scmp.lt.u32.totalorder %s383_s3, %s580_s27 }
  0x1b   : > { %p387_p6 = pneg %p386_p5  ;;  %p391_p10 = por %p390_p7, %p389_p4 }
  0x1d   : > { %p393_p12 = por %p392_p13, %p391_p10 }
  0x1f   : > { %p394_p1 = pnand %p393_p12, %p387_p6 }
  0x21   : > { %397 = shalt.err (!%p394_p1)
}
  0x22   : > { %s398_s16 = scalar_lea.vmem %s582_s29, 128  ;;  %s497_s17 = smov [#allocation2]  }
  0x23   : > { %p399_p2 = scmp.ne.s32.totalorder %s582_s29, %s398_s16  ;;  %s403_s22 = sshll.u32 %s497_s17, 4  ;;  %s404_s22 = int_to_ptr.vmem [resolvable:$false] %s403_s22 }
  0x24   : > { %s405_s23 = scalar_lea.vmem %s404_s22, 256  ;;  %p406_p9 = scmp.lt.s32.totalorder %s582_s29, %s404_s22 }
  0x25   : > { %p401_p5 = pnand %p399_p2, %p385_p3  ;;  %p407_p4 = scmp.lt.s32.totalorder %s405_s23, %s398_s16 }
  0x27   : > { %p402_p11 = pneg %p401_p5  ;;  %p408_p7 = por %p407_p4, %p406_p9 }
  0x29   : > { %p409_p10 = pnand %p408_p7, %p402_p11 }
  0x2b   : > { %412 = shalt.err (!%p409_p10)
}
  0x2c   : > { %s498_s24 = smov 32   ;;  %s499_s25 = smov 2  }
  0x2d   : > { %314 = dma.hbm_to_vmem [thread:$0]  (!%p586_p0), %s580_s27, 128, %s582_s29, %s591_s2, %s498_s24, %s498_s24, %s499_s25  }
  0x2e   : > { %p123_p12 = scmp.lt.s32.totalorder %s495_s11, 3  ;;  %p693_p1 = scmp.ge.s32.totalorder %s495_s11, 1 }
  0x30   : > { %p124_p3 = pnand %p693_p1, %p123_p12 }
  0x31   : > { %s623_s26 = sand.u32 (!%p124_p3), 1, %s479_s7  }
  0x32   : > { %127 = sbr.rel (%p124_p3) target bundleno = 119 (0x77), region = 24  ;;  %s297_s28 = sshll.u32 (!%p124_p3), %s623_s26, 3 }
  0x33   : > { %s130_s3 = scalar_lea.sflag (!%p124_p3), [#allocation3], %s623_s26  ;;  %s133_s4 = scalar_lea.vmem (!%p124_p3), [#allocation2], %s297_s28 }
  0x39   : > { %466 = dma.done.wait (%p558_p8), %s130_s3, 128  }
  0x3a   : > { %468 = vsyncadd (%p558_p8), %s130_s3, 4294967168  ;;  %v152_v0 = vld [vmem:[%s133_s4] sm:$0x3]  ;;  %v299_v1 = vld [vmem:[%s133_s4 + $0x2] sm:$0x3]  ;;  %s298_s18 = sshll.u32 %s623_s26, 1 }
  0x3b   : > { %v300_v2 = vld [vmem:[%s133_s4 + $0x4] sm:$0x3]  ;;  %v155_v3 = vmax.f32 %v152_v0, %v299_v1  ;;  %v301_v4 = vld [vmem:[%s133_s4 + $0x6] sm:$0x3]  ;;  %s151_s27 = scalar_lea.vmem [#allocation5], %s298_s18  ;;  %s303_s30 = sshll.u32 %s487_s9, 5 }
  0x3c   : > { %s208_s29 = sshll.u32 %s151_s27, 4  ;;  %s638_s12 = scalar_lea.hbm %s686_s1, %s303_s30  ;;  %s633_s29 = int_to_ptr.vmem [resolvable:$true] %s208_s29 }
  0x3d   : > { %v158_v5 = vmax.f32 %v155_v3, %v300_v2  ;;  %s194_s13 = scalar_lea.sflag [#allocation4], %s623_s26  ;;  %s413_s15 = scalar_lea.vmem %s633_s29, 32 }
  0x3e   : > { %p414_p8 = scmp.ne.s32.totalorder %s633_s29, %s413_s15  ;;  %p694_p9 = scmp.ne.s32.totalorder %s690_s19, 0 }
  0x3f   : > { %v161_v6 = vmax.f32 %v158_v5, %v301_v4  ;;  %s500_s9 = smov [#allocation5]  }
  0x40   : > { %p415_p11 = pnand %p414_p8, %p694_p9  ;;  %s417_s16 = sshll.u32 %s500_s9, 4  ;;  %s418_s16 = int_to_ptr.vmem [resolvable:$false] %s417_s16 }
  0x41   : > { %v162_v7 = vsub.f32 %v152_v0, %v161_v6  ;;  %v168_v8 = vsub.f32 %v299_v1, %v161_v6  ;;  %v174_v9 = vsub.f32 %v300_v2, %v161_v6  ;;  %v180_v10 = vsub.f32 %v301_v4, %v161_v6  ;;  %s419_s17 = scalar_lea.vmem %s418_s16, 64  ;;  %p420_p6 = scmp.lt.s32.totalorder %s633_s29, %s418_s16 }
  0x42   : > { %p416_p0 = pneg %p415_p11  ;;  %p421_p13 = scmp.lt.s32.totalorder %s419_s17, %s413_s15 }
  0x43   : > { %v163_v11 = vmul.f32 1.442695, %v162_v7  ;;  %v169_v12 = vmul.f32 1.442695, %v168_v8  ;;  %v175_v13 = vmul.f32 1.442695, %v174_v9 }
  0x44   : > { %v181_v14 = vmul.f32 1.442695, %v180_v10  ;;  %p422_p2 = por %p421_p13, %p420_p6 }
  0x45   : > { %371 = vpow2.f32 %v163_v11 }
  0x46   : > { %373 = vpow2.f32 %v169_v12  ;;  %p423_p5 = pnand %p422_p2, %p416_p0 }
  0x47   : > { %375 = vpow2.f32 %v175_v13 }
  0x48   : > { %377 = vpow2.f32 %v181_v14 }
  0x4f   : > { %v372_v15 = vpop.eup %371 }
  0x50   : > { %v374_v16 = vpop.eup %373  ;;  %v166_v20 = vmul.f32 %v372_v15, %v162_v7 }
  0x51   : > { %v376_v17 = vpop.eup %375  ;;  %v171_v18 = vadd.f32 %v374_v16, %v372_v15  ;;  %v172_v21 = vmul.f32 %v374_v16, %v168_v8 }
  0x52   : > { %v378_v19 = vpop.eup %377  ;;  %v178_v25 = vmul.f32 %v376_v17, %v174_v9 }
  0x53   : > { %v177_v22 = vadd.f32 %v376_v17, %v171_v18  ;;  %v173_v24 = vadd.f32 %v172_v21, %v166_v20  ;;  %v184_v27 = vmul.f32 %v378_v19, %v180_v10 }
  0x55   : > { %v183_v23 = vadd.f32 %v378_v19, %v177_v22  ;;  %v179_v26 = vadd.f32 %v178_v25, %v173_v24 }
  0x57   : > { %379 = vlog2.f32 %v183_v23  ;;  %v185_v28 = vadd.f32 %v184_v27, %v179_v26 }
  0x58   : > { %381 = vrcp.f32 %v183_v23 }
  0x61   : > { %v380_v29 = vpop.eup %379 }
  0x62   : > { %v382_v30 = vpop.eup %381  ;;  %v187_v31 = vmul.f32 0.6931472, %v380_v29 }
  0x63   : > { %v189_v32 = vmul.f32 %v382_v30, %v185_v28 }
  0x65   : > { %v190_v33 = vsub.f32 %v187_v31, %v189_v32 }
  0x67   : > { %v191_v34 = vmul.f32 1.442695, %v190_v33 }
  0x69   : > { %192 = vst [vmem:[%s151_s27] sm:$0x3] %v191_v34 }
  0x6a   : > { %426 = shalt.err (!%p423_p5)
}
  0x6b   : > { %s427_s22 = scalar_lea.hbm %s638_s12, 32  ;;  %s431_s25 = scalar_lea.hbm %s686_s1, 64 }
  0x6c   : > { %p428_p4 = scmp.ne.s32.totalorder %s638_s12, %s427_s22  ;;  %p432_p12 = scmp.lt.u32.totalorder %s638_s12, %s686_s1 }
  0x6d   : > { %p433_p1 = scmp.lt.u32.totalorder %s431_s25, %s427_s22  ;;  %p435_p8 = scmp.lt.u32.totalorder %s427_s22, %s638_s12 }
  0x6e   : > { %p429_p7 = pnand %p428_p4, %p694_p9 }
  0x6f   : > { %p434_p3 = por %p433_p1, %p432_p12 }
  0x70   : > { %p430_p10 = pneg %p429_p7 }
  0x71   : > { %p436_p11 = por %p435_p8, %p434_p3 }
  0x73   : > { %p437_p0 = pnand %p436_p11, %p430_p10 }
  0x75   : > { %440 = shalt.err (!%p437_p0)
}
  0x76   : > { %309 = dma.vmem_to_hbm [thread:$0]  (%p694_p9), %s633_s29, 32, %s638_s12, %s194_s13  }
  0x77 PF: > { %s220_s3 = sand.u32 1, %s475_s6   ;;  %p695_p6 = scmp.ne.s32.totalorder %s691_s21, 0 }
  0x78   : > { %p696_p13 = scmp.ge.s32.totalorder %s495_s11, 2  ;;  %s221_s4 = scalar_lea.sflag [#allocation4], %s220_s3 }
  0x7a   : > { %p316_p2 = pnand %p696_p13, %p695_p6 }
  0x7c   : > { %470 = dma.done.wait (!%p316_p2), %s221_s4, 32  }
  0x7d   : > { %472 = vsyncadd (!%p316_p2), %s221_s4, 4294967264  ;;  %s17_s11 = sadd.s32 1, %s495_s11   ;;  %s697_s6 = smov %s479_s7 }
  0x7e   : > { %p14_p5 = scmp.ge.s32.totalorder %s17_s11, 4   ;;  %s698_s7 = smov %s483_s8 }
  0x7f   : > { %s699_s8 = smov %s567_s20  ;;  %s700_s9 = smov %s491_s10 }
  0x80   : > { %s701_s10 = smov %s703_s14  ;;  %16 = sbr.rel (!%p14_p5) target bundleno = 6 (0x6), region = 72 }
  0x87   :  { %226 = vsyncpa [#allocation3], 1 }
  0x88   :  { %228 = vsyncpa [#allocation3 + $0x1], 1 }
  0x89   :  { %229 = vsyncpa [#allocation4], 1 }
  0x8a   :  { %231 = vsyncpa [#allocation4 + $0x1], 1 }

</bundles_post_ra>
